<compile_context>
chip_gen: v5e
topology: v5e:2x2
jax: 0.10.0
libtpu: 0.0.40
codegen_flags: <defaults>
</compile_context>

<pallas_src>
import jax
import jax.numpy as jnp
from jax.experimental import pallas as pl
from jax.experimental.pallas import tpu as pltpu


def _mlp_kernel(x_ref, w1_ref, b1_ref, w2_ref, b2_ref, o_ref):
    # Hidden layer: h = x @ W1 + b1   (MXU, f32 accumulation)
    h = jnp.dot(x_ref[...], w1_ref[...], preferred_element_type=jnp.float32)
    h = h + b1_ref[...]  # b1 is (1, D_hid) -> broadcasts over batch rows

    # Mish(h) = h * tanh(softplus(h)).
    # tanh(log(u)) = (u^2 - 1) / (u^2 + 1) with u = 1 + exp(h); clamp the exp
    # argument at 20 (torch softplus threshold) -- for h >= 20 the ratio is
    # already 1 to within ~1e-17, so m == h there, matching torch.
    t = jnp.exp(jnp.minimum(h, 20.0))
    u = 1.0 + t
    u2 = u * u
    tanh_sp = (u2 - 1.0) * pl.reciprocal(u2 + 1.0, approx=True)
    m = h * tanh_sp

    # Output layer: y = m @ W2 + b2
    y = jnp.dot(m, w2_ref[...], preferred_element_type=jnp.float32)
    o_ref[...] = (y + b2_ref[...]).astype(o_ref.dtype)


def mlp_pallas(x, w1, b1, w2, b2, *, row_tile=512):
    """x: (N, D_in); w1: (D_in, D_in); b1: (1, D_in); w2: (D_in, D_out); b2: (1, D_out)."""
    n, d_in = x.shape
    d_hid = w1.shape[1]
    assert w1.shape == (d_in, d_hid) and d_hid == d_in, (
        "MLP module uses hidden_size == input_size")
    d_out = w2.shape[1]
    assert w2.shape[0] == d_in and b1.shape == (1, d_in) and b2.shape == (1, d_out)

    # Lane-dense output: pad the output feature dim to a multiple of 128 so the
    # output store uses full vregs (unmasked vst) instead of 16/128 lanes.
    d_out_p = ((d_out + 127) // 128) * 128
    if d_out_p != d_out:
        w2 = jnp.pad(w2, ((0, 0), (0, d_out_p - d_out)))
        b2 = jnp.pad(b2, ((0, 0), (0, d_out_p - d_out)))

    # Row grid over the batch; weights/biases stay resident in VMEM across steps.
    tm = min(row_tile, ((n + 7) // 8) * 8)
    n_pad = pl.cdiv(n, tm) * tm
    if n_pad != n:
        x = jnp.pad(x, ((0, n_pad - n), (0, 0)))

    out = pl.pallas_call(
        _mlp_kernel,
        out_shape=jax.ShapeDtypeStruct((n_pad, d_out_p), x.dtype),
        grid=(n_pad // tm,),
        in_specs=[
            pl.BlockSpec((tm, d_in), lambda i: (i, 0)),
            pl.BlockSpec((d_in, d_in), lambda i: (0, 0)),      # W1 resident
            pl.BlockSpec((1, d_in), lambda i: (0, 0)),          # b1 resident
            pl.BlockSpec((d_in, d_out_p), lambda i: (0, 0)),    # W2 resident
            pl.BlockSpec((1, d_out_p), lambda i: (0, 0)),       # b2 resident
        ],
        out_specs=pl.BlockSpec((tm, d_out_p), lambda i: (i, 0)),
        compiler_params=pltpu.CompilerParams(
            dimension_semantics=("parallel",)),  # lets v7x's 2 TCs split rows
    )(x, w1, b1, w2, b2)
    # Strip row / lane padding.
    return out[:n, :d_out]


def mlp_reference(x, w1, b1, w2, b2):
    h = x @ w1 + b1
    m = h * jnp.tanh(jax.nn.softplus(h))
    return m @ w2 + b2


if __name__ == "__main__":
    # MLP(input_size=32, output_size=16), batch of 8 rows.
    input_size, output_size, batch = 32, 16, 8

    key = jax.random.PRNGKey(0)
    kx, k1, k2, k3, k4 = jax.random.split(key, 5)

    x = jax.random.normal(kx, (batch, input_size), dtype=jnp.float32)

    # Deterministic synthetic params (PyTorch-Linear-like uniform init scale),
    # stored pre-transposed as (in, out).
    bound1 = 1.0 / (input_size ** 0.5)
    w1 = jax.random.uniform(k1, (input_size, input_size), jnp.float32, -bound1, bound1)
    b1 = jax.random.uniform(k2, (1, input_size), jnp.float32, -bound1, bound1)
    w2 = jax.random.uniform(k3, (input_size, output_size), jnp.float32, -bound1, bound1)
    b2 = jax.random.uniform(k4, (1, output_size), jnp.float32, -bound1, bound1)

    out = mlp_pallas(x, w1, b1, w2, b2)
    jax.block_until_ready(out)

    ref = mlp_reference(x, w1, b1, w2, b2)
    assert out.shape == (batch, output_size)
    # Tolerance accounts for the EUP approx-reciprocal in the Mish rewrite.
    assert jnp.allclose(out, ref, atol=1e-3, rtol=1e-3)

    print("KERNEL_OK")
</pallas_src>

<mosaic_0001>
module attributes {stable_mosaic.version = 11 : i64} {
  func.func @_mlp_kernel(%arg0: i32, %arg1: memref<8x32xf32, #tpu.memory_space<vmem>>, %arg2: memref<32x32xf32, #tpu.memory_space<vmem>>, %arg3: memref<1x32xf32, #tpu.memory_space<vmem>>, %arg4: memref<32x128xf32, #tpu.memory_space<vmem>>, %arg5: memref<1x128xf32, #tpu.memory_space<vmem>>, %arg6: memref<8x128xf32, #tpu.memory_space<vmem>>) attributes {dimension_semantics = [#tpu.dimension_semantics<parallel>], iteration_bounds = array<i64: 1>, scalar_prefetch = 0 : i64, scratch_operands = 0 : i64, tpu.core_type = #tpu.core_type<tc>, window_params = [{transform_indices = @transform_0, window_bounds = array<i64: 8, 32>}, {pipeline_mode = #tpu.pipeline_mode<synchronous>, transform_indices = @transform_1, window_bounds = array<i64: 32, 32>}, {pipeline_mode = #tpu.pipeline_mode<synchronous>, transform_indices = @transform_2, window_bounds = array<i64: 1, 32>}, {pipeline_mode = #tpu.pipeline_mode<synchronous>, transform_indices = @transform_3, window_bounds = array<i64: 32, 128>}, {pipeline_mode = #tpu.pipeline_mode<synchronous>, transform_indices = @transform_4, window_bounds = array<i64: 1, 128>}, {transform_indices = @transform_5, window_bounds = array<i64: 8, 128>}]} {
    %c0 = arith.constant 0 : index
    %c0_0 = arith.constant 0 : index
    %0 = vector.load %arg1[%c0, %c0_0] : memref<8x32xf32, #tpu.memory_space<vmem>>, vector<8x32xf32>
    %c0_1 = arith.constant 0 : index
    %c0_2 = arith.constant 0 : index
    %1 = vector.load %arg2[%c0_1, %c0_2] : memref<32x32xf32, #tpu.memory_space<vmem>>, vector<32x32xf32>
    %cst = arith.constant dense<0.000000e+00> : vector<8x32xf32>
    %2 = tpu.matmul %0, %1, %cst {dimension_numbers = #tpu.dot_dimension_numbers<[1], [0], [0], [1], [0, 0, 1, 1], [], []>} : vector<8x32xf32>, vector<32x32xf32>, vector<8x32xf32> -> vector<8x32xf32>
    %c0_3 = arith.constant 0 : index
    %c0_4 = arith.constant 0 : index
    %3 = vector.load %arg3[%c0_3, %c0_4] : memref<1x32xf32, #tpu.memory_space<vmem>>, vector<1x32xf32>
    %4 = vector.broadcast %3 : vector<1x32xf32> to vector<8x32xf32>
    %5 = arith.addf %2, %4 : vector<8x32xf32>
    %cst_5 = arith.constant 2.000000e+01 : f32
    %6 = vector.broadcast %cst_5 : f32 to vector<8x32xf32>
    %7 = arith.minimumf %5, %6 : vector<8x32xf32>
    %8 = math.exp %7 : vector<8x32xf32>
    %cst_6 = arith.constant 1.000000e+00 : f32
    %9 = vector.broadcast %cst_6 : f32 to vector<8x32xf32>
    %10 = arith.addf %9, %8 : vector<8x32xf32>
    %11 = arith.mulf %10, %10 : vector<8x32xf32>
    %cst_7 = arith.constant 1.000000e+00 : f32
    %12 = vector.broadcast %cst_7 : f32 to vector<8x32xf32>
    %13 = arith.subf %11, %12 : vector<8x32xf32>
    %cst_8 = arith.constant 1.000000e+00 : f32
    %14 = vector.broadcast %cst_8 : f32 to vector<8x32xf32>
    %15 = arith.addf %11, %14 : vector<8x32xf32>
    %16 = tpu.reciprocal %15 {approx = true} : vector<8x32xf32> -> vector<8x32xf32>
    %17 = arith.mulf %13, %16 : vector<8x32xf32>
    %18 = arith.mulf %5, %17 : vector<8x32xf32>
    %c0_9 = arith.constant 0 : index
    %c0_10 = arith.constant 0 : index
    %19 = vector.load %arg4[%c0_9, %c0_10] : memref<32x128xf32, #tpu.memory_space<vmem>>, vector<32x128xf32>
    %cst_11 = arith.constant dense<0.000000e+00> : vector<8x128xf32>
    %20 = tpu.matmul %18, %19, %cst_11 {dimension_numbers = #tpu.dot_dimension_numbers<[1], [0], [0], [1], [0, 0, 1, 1], [], []>} : vector<8x32xf32>, vector<32x128xf32>, vector<8x128xf32> -> vector<8x128xf32>
    %c0_12 = arith.constant 0 : index
    %c0_13 = arith.constant 0 : index
    %21 = vector.load %arg5[%c0_12, %c0_13] : memref<1x128xf32, #tpu.memory_space<vmem>>, vector<1x128xf32>
    %22 = vector.broadcast %21 : vector<1x128xf32> to vector<8x128xf32>
    %23 = arith.addf %20, %22 : vector<8x128xf32>
    %c0_14 = arith.constant 0 : index
    %c0_15 = arith.constant 0 : index
    %24 = vector.load %arg6[%c0_14, %c0_15] : memref<8x128xf32, #tpu.memory_space<vmem>>, vector<8x128xf32>
    tpu.vector_store %arg6[%c0_14, %c0_15], %23 {strides = array<i32>} : memref<8x128xf32, #tpu.memory_space<vmem>>, vector<8x128xf32>,
    return
  }
  func.func @transform_0(%arg0: i32) -> (i32, i32) {
    %c0_i32 = arith.constant 0 : i32
    %c0_i32_0 = arith.constant 0 : i32
    return %arg0, %c0_i32 : i32, i32
  }
  func.func @transform_1(%arg0: i32) -> (i32, i32) {
    %c0_i32 = arith.constant 0 : i32
    %c0_i32_0 = arith.constant 0 : i32
    %c0_i32_1 = arith.constant 0 : i32
    return %c0_i32, %c0_i32_0 : i32, i32
  }
  func.func @transform_2(%arg0: i32) -> (i32, i32) {
    %c0_i32 = arith.constant 0 : i32
    %c0_i32_0 = arith.constant 0 : i32
    %c0_i32_1 = arith.constant 0 : i32
    return %c0_i32, %c0_i32_0 : i32, i32
  }
  func.func @transform_3(%arg0: i32) -> (i32, i32) {
    %c0_i32 = arith.constant 0 : i32
    %c0_i32_0 = arith.constant 0 : i32
    %c0_i32_1 = arith.constant 0 : i32
    return %c0_i32, %c0_i32_0 : i32, i32
  }
  func.func @transform_4(%arg0: i32) -> (i32, i32) {
    %c0_i32 = arith.constant 0 : i32
    %c0_i32_0 = arith.constant 0 : i32
    %c0_i32_1 = arith.constant 0 : i32
    return %c0_i32, %c0_i32_0 : i32, i32
  }
  func.func @transform_5(%arg0: i32) -> (i32, i32) {
    %c0_i32 = arith.constant 0 : i32
    %c0_i32_0 = arith.constant 0 : i32
    return %arg0, %c0_i32 : i32, i32
  }
}

</mosaic_0001>

<bundles_post_ra>
// kernel: tpu_custom_call.1
= control target key start
LH: loop header
LB: loop body
LE: loop exit
PB: predicated region body
PF: predicated region fallthrough
CT: control target
= control target key end

     0   :  { %10 = vsyncpa [#allocation3], 0  ;;  %s332_s0 = inlined_call_operand.hbm [shape: f32[8,32], index: 0, kind: input, shape index: {}]   ;;  %s333_s1 = inlined_call_operand.hbm [shape: f32[32,32], index: 1, kind: input, shape index: {}]   ;;  %s334_s2 = inlined_call_operand.vmem [shape: f32[1,32], index: 2, kind: input, shape index: {}]   ;;  %s335_s3 = inlined_call_operand.hbm [shape: f32[32,128], index: 3, kind: input, shape index: {}]   ;;  %s336_s4 = inlined_call_operand.vmem [shape: f32[1,128], index: 4, kind: input, shape index: {}]   ;;  %s337_s5 = inlined_call_operand.hbm [shape: f32[8,128], index: 5, kind: output, shape index: {}]  }
   0x1   :  { %11 = vsyncpa [#allocation6], 0  ;;  %s28_s20 = sshll.u32 %s333_s1, 4  ;;  %s29_s20 = int_to_ptr.hbm [resolvable:$true] %s28_s20 }
   0x2   :  { %12 = vsyncpa [#allocation4], 0  ;;  %s276_s21 = smov [#allocation5]   ;;  %s18_s25 = sshll.u32 %s332_s0, 4  ;;  %s19_s25 = int_to_ptr.hbm [resolvable:$true] %s18_s25 }
   0x3   :  { %s30_s22 = sshll.u32 %s276_s21, 4  ;;  %s277_s26 = smov 128   ;;  %s31_s22 = int_to_ptr.vmem [resolvable:$true] %s30_s22 }
   0x4   :  { %s278_s27 = smov 8   ;;  %s279_s28 = smov [#allocation2]  }
   0x5   :  { %36 = dma.hbm_to_vmem [thread:$0]  %s29_s20, 512, %s31_s22, [#allocation6], %s277_s26, %s277_s26, %s278_s27  }
   0x6   :  { %s20_s29 = sshll.u32 %s279_s28, 4  ;;  %s43_s7 = sshll.u32 %s335_s3, 4  ;;  %s21_s29 = int_to_ptr.vmem [resolvable:$true] %s20_s29  ;;  %s44_s7 = int_to_ptr.hbm [resolvable:$true] %s43_s7 }
   0x7   :  { %23 = dma.hbm_to_vmem [thread:$0]  %s19_s25, 128, %s21_s29, [#allocation3]  }
   0x8   :  { %s280_s1 = smov [#allocation7]  }
   0x9   :  { %s45_s8 = sshll.u32 %s280_s1, 4  ;;  %s46_s8 = int_to_ptr.vmem [resolvable:$true] %s45_s8 }
   0xa   :  { %51 = dma.hbm_to_vmem [thread:$0]  %s44_s7, 512, %s46_s8, [#allocation6], %s277_s26, %s277_s26, %s278_s27  }
   0xb   :  { %270 = dma.done.wait [#allocation3], 128  }
   0xc   :  { %271 = vsyncadd [#allocation3], 4294967168 }
   0xd   :  { %272 = dma.done.wait [#allocation6], 1024  }
   0xe   :  { %273 = vsyncadd [#allocation6], 4294966272  ;;  %v70_v0 = vld [vmem:[#allocation5 + $0x18] sm:$0xff]  ;;  %v69_v1 = vld [vmem:[#allocation5 + $0x10] sm:$0xff]  ;;  %vm75_vm0 = vcmask 261120   ;;  %s281_s10 = smov [#allocation8]  }
   0xf   :  { %91 = vmatpush.msra.mxu0 %v70_v0  ;;  %v68_v2 = vld [vmem:[#allocation5 + $0x8] sm:$0xff]  ;;  %v67_v3 = vld [vmem:[#allocation5] sm:$0xff]  ;;  %v66_v4 = vld [vmem:[#allocation2] sm:$0xff]  ;;  %s146_s11 = sshll.u32 %s281_s10, 4  ;;  %s148_s14 = sshll.u32 %s337_s5, 4  ;;  %s147_s11 = int_to_ptr.vmem [resolvable:$true] %s146_s11  ;;  %s149_s14 = int_to_ptr.hbm [resolvable:$true] %s148_s14 }
  0x10   :  { %v112_v5 = vld [vmem:[#allocation7 + $0x18] sm:$0xff]  ;;  %v111_v6 = vld [vmem:[#allocation7 + $0x10] sm:$0xff]  ;;  %v110_v7 = vld [vmem:[#allocation7 + $0x8] sm:$0xff] }
  0x11   :  { %92 = vmatpush.msra.mxu0 %v69_v1  ;;  %132 = vmatpush.msra.mxu1 %v112_v5  ;;  %v168_v8 = vld [vmem:[%s334_s2] ss:$0 sm:$0xff]  ;;  %v109_v9 = vld [vmem:[#allocation7] sm:$0xff] }
  0x12   :  { %v169_v22 = vld [vmem:[%s336_s4] ss:$0 sm:$0xff] }
  0x13   :  { %93 = vmatpush.msra.mxu0 %v68_v2  ;;  %133 = vmatpush.msra.mxu1 %v111_v6 }
  0x15   :  { %94 = vmatpush.msra.mxu0 %v67_v3  ;;  %134 = vmatpush.msra.mxu1 %v110_v7 }
  0x16   :  { %159 = vmatmul.msk.f32.vlgmr.msra.gmra.mxu0 %vm75_vm0, %v66_v4 }
  0x17   :  { %135 = vmatpush.msra.mxu1 %v109_v9 }
  0x93   :  { %v96_v10 = vpop.f32.mrf.mxu0 }
  0x94   :  { %v97_v11 = vadd.f32 %v168_v8, %v96_v10 }
  0x96   :  { %v99_v12 = vmin.f32 %v97_v11, 20.0 }
  0x98   :  { %v100_v13 = vmul.f32 1.442695, %v99_v12 }
  0x9a   :  { %170 = vpow2.f32 %v100_v13 }
  0xa0   :  { %v171_v14 = vpop.eup %170 }
  0xa1   :  { %v102_v15 = vadd.f32 1.0, %v171_v14 }
  0xa3   :  { %v103_v16 = vmul.f32 %v102_v15, %v102_v15 }
  0xa5   :  { %v105_v17 = vadd.f32 1.0, %v103_v16  ;;  %v160_v18 = vadd.f32 -1.0, %v103_v16 }
  0xa7   :  { %172 = vrcp.f32 %v105_v17 }
  0xad   :  { %v173_v19 = vpop.eup %172 }
  0xae   :  { %v107_v20 = vmul.f32 %v173_v19, %v160_v18 }
  0xb0   :  { %v108_v21 = vmul.f32 %v107_v20, %v97_v11 }
  0xb2   :  { %161 = vmatmul.msk.f32.vlgmr.msra.gmra.mxu1 %vm75_vm0, %v108_v21 }
 0x12f   :  { %v137_v23 = vpop.f32.mrf.mxu1 }
 0x130   :  { %v138_v24 = vadd.f32 %v169_v22, %v137_v23 }
 0x132   :  { %140 = vst [vmem:[#allocation8] sm:$0xff] %v138_v24 }
 0x133   :  { %151 = dma.vmem_to_hbm [thread:$0]  %s147_s11, 128, %s149_s14, [#allocation4]  }
 0x134   :  { %274 = dma.done.wait [#allocation4], 128  }
 0x135   :  { %275 = vsyncadd [#allocation4], 4294967168 }
 0x136   :  { %156 = vsyncpa [#allocation3], 1 }
 0x137   :  { %157 = vsyncpa [#allocation6], 1 }
 0x138   :  { %158 = vsyncpa [#allocation4], 1 }

</bundles_post_ra>
